<compile_context>
chip_gen: v7x
topology: tpu7x:2x2x1
jax: 0.10.0
libtpu: 0.0.40
codegen_flags: <defaults>
</compile_context>

<pallas_src>
import functools

import jax
import jax.numpy as jnp
from jax.experimental import pallas as pl
from jax.experimental.pallas import tpu as pltpu

FP8_MAX = 448.0  # float8_e4m3fn max magnitude


# --------------------------------------------------------------------------- #
# Hardware-dependent defaults                                                  #
# --------------------------------------------------------------------------- #
def _device_kind():
    try:
        return jax.devices()[0].device_kind.lower()
    except Exception:
        return ""


def _is_v7x():
    return "7" in _device_kind()


def _vmem_limit_bytes():
    # v7x: 64 MiB physical VMEM per TensorCore -> cap at 32 MiB scoped.
    # v5e/v6e: 128 MiB physical -> allow 64 MiB so big tiles / deep buffering fit.
    return (32 * 1024 * 1024) if _is_v7x() else (64 * 1024 * 1024)


def _default_mxu_dtype():
    # v7x MXU consumes fp8 natively; earlier generations upcast to bf16
    # (e4m3 values are exactly representable in bf16, so the matmul is exact).
    return jnp.float8_e4m3fn if _is_v7x() else jnp.bfloat16


def _pick_tile(dim, candidates):
    """Largest candidate that evenly divides `dim`, else the full dim."""
    for c in candidates:
        if c <= dim and dim % c == 0:
            return c
    return dim


# --------------------------------------------------------------------------- #
# quant_input: x (hp dtype) -> fp8_e4m3, scaled by 1/scale_input.              #
# Standalone pass; tiled over BOTH M and K so large-K layers never blow VMEM.  #
# --------------------------------------------------------------------------- #
def _quant_input_kernel(inv_scale_ref, x_ref, xq_ref):
    xf = x_ref[...].astype(jnp.float32) * inv_scale_ref[0]
    xq_ref[...] = jnp.clip(xf, -FP8_MAX, FP8_MAX).astype(jnp.float8_e4m3fn)


def quantize_input_fp8(x, scale_input, *, tm=None, tk=None):
    M, K = x.shape
    tm = tm or _pick_tile(M, (512, 256, 128, 64, 32))
    tk = tk or _pick_tile(K, (2048, 1024, 512, 256, 128))
    xb = jnp.dtype(x.dtype).itemsize
    budget = int(_vmem_limit_bytes() * 0.5)
    # double-buffered input + double-buffered fp8 output must fit the budget
    while 2 * tm * tk * (xb + 1) > budget and tm > 8 and tm % 2 == 0:
        tm //= 2
    inv_scale = (1.0 / scale_input.reshape(-1)[:1]).astype(jnp.float32)
    return pl.pallas_call(
        _quant_input_kernel,
        out_shape=jax.ShapeDtypeStruct((M, K), jnp.float8_e4m3fn),
        grid_spec=pltpu.PrefetchScalarGridSpec(
            num_scalar_prefetch=1,
            grid=(M // tm, K // tk),
            in_specs=[pl.BlockSpec((tm, tk), lambda i, j, inv: (i, j))],
            out_specs=pl.BlockSpec((tm, tk), lambda i, j, inv: (i, j)),
        ),
        compiler_params=pltpu.CompilerParams(
            dimension_semantics=("parallel", "parallel"),
            vmem_limit_bytes=_vmem_limit_bytes()),
    )(inv_scale, x)


# --------------------------------------------------------------------------- #
# fp8 GEMM + dequant (+ optional fused input quant, + optional bias).          #
# --------------------------------------------------------------------------- #
def _gemm_kernel(*refs, fused_quant, has_bias, mxu_dtype):
    scalars_ref, a_ref, w_ref = refs[0], refs[1], refs[2]
    if has_bias:
        b_ref, o_ref, acc_ref = refs[3], refs[4], refs[5]
    else:
        b_ref = None
        o_ref, acc_ref = refs[3], refs[4]

    k = pl.program_id(2)

    @pl.when(k == 0)
    def _():
        acc_ref[...] = jnp.zeros_like(acc_ref)

    if fused_quant:
        # quant_input fused into the A-tile path (decode / small-N shapes).
        inv_s = scalars_ref[1]
        a = jnp.clip(a_ref[...].astype(jnp.float32) * inv_s,
                     -FP8_MAX, FP8_MAX).astype(jnp.float8_e4m3fn).astype(mxu_dtype)
    else:
        a = a_ref[...].astype(mxu_dtype)
    b = w_ref[...].astype(mxu_dtype)
    acc_ref[...] += jnp.dot(a, b, preferred_element_type=jnp.float32)

    @pl.when(k == pl.num_programs(2) - 1)
    def _():
        out = acc_ref[...] * scalars_ref[0]          # s_in * s_w dequant
        if has_bias:
            out = out + b_ref[...].astype(jnp.float32)
        o_ref[...] = out.astype(o_ref.dtype)


def patched_row_parallel_linear(x, weight_t_fp8, bias, scale_input, scale_weight,
                                *, tm=None, tn=None, tk=None,
                                out_dtype=jnp.bfloat16,
                                mxu_dtype=None,
                                fuse_quant=None,
                                weight_buffers=2,
                                skip_bias_add=False):
    """Forward of PatchedRowParallelLinear (quantize mode). Returns (output, output_bias)."""
    M, K = x.shape
    Kw, N = weight_t_fp8.shape
    assert K == Kw

    mxu_dtype = mxu_dtype or _default_mxu_dtype()
    out_bytes = jnp.dtype(out_dtype).itemsize

    # ---- tile selection: big tiles first, then fit to the VMEM budget ---- #
    tm = tm or _pick_tile(M, (512, 256, 128, 64, 32))
    tn = tn or _pick_tile(N, (2048, 1024, 512, 256, 128))
    tk = tk or _pick_tile(K, (2048, 1024, 512, 256, 128))

    # Fuse fp8 quantization of x into the GEMM when x would only be re-read
    # once or twice anyway (decode / small-N) -> skip a full M*K HBM round trip.
    if fuse_quant is None:
        fuse_quant = (N // tn) <= 2 or M <= 128
    a_bytes = jnp.dtype(x.dtype).itemsize if fuse_quant else 1

    budget = int(_vmem_limit_bytes() * 0.6)

    def _footprint(tm_, tn_, tk_):
        return (2 * tm_ * tk_ * a_bytes        # A (double-buffered)
                + 2 * tk_ * tn_                # W fp8 (double-buffered)
                + 2 * tm_ * tn_ * out_bytes    # output (double-buffered)
                + tm_ * tn_ * 4                # f32 accumulator
                + 2 * tn_ * 4)                 # bias

    while _footprint(tm, tn, tk) > budget:
        if tk > 128 and tk % 2 == 0:
            tk //= 2
        elif tn > 128 and tn % 2 == 0:
            tn //= 2
        elif tm > 32 and tm % 2 == 0:
            tm //= 2
        else:
            break

    # v7x megacore: ensure the parallel (i, j) axes expose >= 2 programs so
    # both TensorCores get work on decode-sized problems.
    if _is_v7x():
        while (M // tm) * (N // tn) < 2:
            if tn >= 256 and N % (tn // 2) == 0:
                tn //= 2
            elif tm >= 64 and M % (tm // 2) == 0:
                tm //= 2
            else:
                break

    assert M % tm == 0 and N % tn == 0 and K % tk == 0

    # quant_input: either a single standalone fp8 pass or fused into the GEMM.
    a_in = x if fuse_quant else quantize_input_fp8(x, scale_input)

    inv_scale_in = 1.0 / scale_input.reshape(-1)[0]
    dequant = scale_input.reshape(-1)[0] * scale_weight.reshape(-1)[0]
    scalars = jnp.stack([dequant, inv_scale_in]).astype(jnp.float32)

    has_bias = (bias is not None) and (not skip_bias_add)

    grid = (M // tm, N // tn, K // tk)

    if weight_buffers == 2:
        w_spec = pl.BlockSpec((tk, tn), lambda i, j, k, s: (k, j))
    else:
        # deeper buffering on the dominant DMA stream (weights) if mem-bound
        w_spec = pl.BlockSpec((tk, tn), lambda i, j, k, s: (k, j),
                              pipeline_mode=pl.Buffered(weight_buffers))

    in_specs = [pl.BlockSpec((tm, tk), lambda i, j, k, s: (i, k)), w_spec]
    inputs = [scalars, a_in, weight_t_fp8]
    if has_bias:
        in_specs.append(pl.BlockSpec((1, tn), lambda i, j, k, s: (0, j)))
        inputs.append(bias.reshape(1, N).astype(jnp.float32))

    cost = pl.CostEstimate(
        flops=2 * M * N * K,
        transcendentals=0,
        bytes_accessed=(M * K * a_bytes * (N // tn)      # A re-read per j tile
                        + K * N * (M // tm)              # W re-read per i tile
                        + M * N * out_bytes
                        + (N * 4 if has_bias else 0)))

    kernel = functools.partial(_gemm_kernel, fused_quant=fuse_quant,
                               has_bias=has_bias, mxu_dtype=mxu_dtype)
    out = pl.pallas_call(
        kernel,
        out_shape=jax.ShapeDtypeStruct((M, N), out_dtype),
        grid_spec=pltpu.PrefetchScalarGridSpec(
            num_scalar_prefetch=1,
            grid=grid,
            in_specs=in_specs,
            out_specs=pl.BlockSpec((tm, tn), lambda i, j, k, s: (i, j)),
            scratch_shapes=[pltpu.VMEM((tm, tn), jnp.float32)],
        ),
        compiler_params=pltpu.CompilerParams(
            dimension_semantics=("parallel", "parallel", "arbitrary"),
            vmem_limit_bytes=_vmem_limit_bytes()),
        cost_estimate=cost,
    )(*inputs)

    # quant_output: identity (out_dtype is already the hp dtype).
    # reduce_results / collective_func: identity on a single device.
    # TODO(synk): multi-device tensor-parallel all-reduce (collective_func) not implemented.
    if skip_bias_add:
        return out, bias
    return out, None


# --------------------------------------------------------------------------- #
# Self-test                                                                    #
# --------------------------------------------------------------------------- #
if __name__ == "__main__":
    key = jax.random.PRNGKey(0)
    ks = jax.random.split(key, 6)

    def make_case(kx, kw, kb, M, K, N, with_bias):
        x = jax.random.normal(kx, (M, K), dtype=jnp.float32).astype(jnp.bfloat16)
        # Original nn.Linear-style weight [out_features, in_features]; module stores W.t().
        w = jax.random.normal(kw, (N, K), dtype=jnp.float32) * 0.05
        bias = (jax.random.normal(kb, (N,), dtype=jnp.float32) * 0.1) if with_bias else None
        # Deterministic max-abs / fp8_max scales (typical HQT calibration).
        scale_weight = jnp.maximum(jnp.max(jnp.abs(w)) / FP8_MAX, 1e-8).reshape(1)
        scale_input = jnp.maximum(jnp.max(jnp.abs(x.astype(jnp.float32))) / FP8_MAX,
                                  1e-8).reshape(1)
        w_t_fp8 = jnp.clip(w.T / scale_weight[0], -FP8_MAX, FP8_MAX
                           ).astype(jnp.float8_e4m3fn)
        return (x, w_t_fp8, bias,
                scale_input.astype(jnp.float32), scale_weight.astype(jnp.float32))

    def reference(x, w_t_fp8, bias, scale_input, scale_weight):
        inv_s = 1.0 / scale_input[0]
        xq = jnp.clip(x.astype(jnp.float32) * inv_s, -FP8_MAX, FP8_MAX
                      ).astype(jnp.float8_e4m3fn).astype(jnp.float32)
        out = (xq @ w_t_fp8.astype(jnp.float32)) * (scale_input[0] * scale_weight[0])
        if bias is not None:
            out = out + bias
        return out

    # Case 1: decode-like (batch=2, seq=8 -> M=16), bias, fused in-kernel quantization.
    x1, w1, b1, si1, sw1 = make_case(ks[0], ks[1], ks[2], M=2 * 8, K=256, N=128,
                                     with_bias=True)
    out1, ob1 = patched_row_parallel_linear(x1, w1, b1, si1, sw1)
    out1 = jax.block_until_ready(out1)
    ref1 = reference(x1, w1, b1, si1, sw1)
    assert out1.shape == (16, 128) and out1.dtype == jnp.bfloat16 and ob1 is None
    assert jnp.allclose(out1.astype(jnp.float32), ref1, atol=3e-2, rtol=3e-2)

    # Case 2: no bias, standalone fp8 quant pass + pre-quantized A GEMM path.
    x2, w2, _, si2, sw2 = make_case(ks[3], ks[4], ks[5], M=64, K=512, N=384,
                                    with_bias=False)
    out2, ob2 = patched_row_parallel_linear(x2, w2, None, si2, sw2, fuse_quant=False)
    out2 = jax.block_until_ready(out2)
    ref2 = reference(x2, w2, None, si2, sw2)
    assert out2.shape == (64, 384) and out2.dtype == jnp.bfloat16 and ob2 is None
    assert jnp.allclose(out2.astype(jnp.float32), ref2, atol=3e-2, rtol=3e-2)

    print("KERNEL_OK")
</pallas_src>

<mosaic_0001>
module attributes {stable_mosaic.version = 11 : i64} {
  func.func @_gemm_kernel(%arg0: i32, %arg1: i32, %arg2: i32, %arg3: memref<2xf32, #tpu.memory_space<smem>>, %arg4: memref<16x256xbf16, #tpu.memory_space<vmem>>, %arg5: memref<256x128xf8E4M3FN, #tpu.memory_space<vmem>>, %arg6: memref<1x128xf32, #tpu.memory_space<vmem>>, %arg7: memref<16x128xbf16, #tpu.memory_space<vmem>>, %arg8: memref<16x128xf32, #tpu.memory_space<vmem>>) attributes {dimension_semantics = [#tpu.dimension_semantics<parallel>, #tpu.dimension_semantics<parallel>, #tpu.dimension_semantics<arbitrary>], iteration_bounds = array<i64: 1, 1, 1>, scalar_prefetch = 1 : i64, scratch_operands = 1 : i64, tpu.core_type = #tpu.core_type<tc>, window_params = [{transform_indices = @transform_0, window_bounds = array<i64: 16, 256>}, {transform_indices = @transform_1, window_bounds = array<i64: 256, 128>}, {transform_indices = @transform_2, window_bounds = array<i64: 1, 128>}, {transform_indices = @transform_3, window_bounds = array<i64: 16, 128>}]} {
    %c0_i32 = arith.constant 0 : i32
    %0 = arith.cmpi eq, %arg2, %c0_i32 : i32
    %1 = arith.extui %0 : i1 to i32
    %c0_i32_0 = arith.constant 0 : i32
    %2 = arith.cmpi ne, %1, %c0_i32_0 : i32
    scf.if %2 {
      %cst_12 = arith.constant 0.000000e+00 : f32
      %23 = vector.broadcast %cst_12 : f32 to vector<16x128xf32>
      %c0_13 = arith.constant 0 : index
      %c0_14 = arith.constant 0 : index
      %24 = vector.load %arg8[%c0_13, %c0_14] : memref<16x128xf32, #tpu.memory_space<vmem>>, vector<16x128xf32>
      tpu.vector_store %arg8[%c0_13, %c0_14], %23 {strides = array<i32>} : memref<16x128xf32, #tpu.memory_space<vmem>>, vector<16x128xf32>,
    } else {
    }
    %c1 = arith.constant 1 : index
    %3 = memref.load %arg3[%c1] : memref<2xf32, #tpu.memory_space<smem>>
    %c0 = arith.constant 0 : index
    %c0_1 = arith.constant 0 : index
    %4 = vector.load %arg4[%c0, %c0_1] : memref<16x256xbf16, #tpu.memory_space<vmem>>, vector<16x256xbf16>
    %5 = arith.extf %4 : vector<16x256xbf16> to vector<16x256xf32>
    %6 = vector.broadcast %3 : f32 to vector<16x256xf32>
    %7 = arith.mulf %5, %6 : vector<16x256xf32>
    %cst = arith.constant -4.480000e+02 : f32
    %cst_2 = arith.constant 4.480000e+02 : f32
    %8 = vector.broadcast %cst : f32 to vector<16x256xf32>
    %9 = arith.maximumf %8, %7 : vector<16x256xf32>
    %10 = vector.broadcast %cst_2 : f32 to vector<16x256xf32>
    %11 = arith.minimumf %10, %9 : vector<16x256xf32>
    %12 = arith.truncf %11 : vector<16x256xf32> to vector<16x256xf8E4M3FN>
    %13 = arith.extf %12 : vector<16x256xf8E4M3FN> to vector<16x256xbf16>
    %c0_3 = arith.constant 0 : index
    %c0_4 = arith.constant 0 : index
    %14 = vector.load %arg5[%c0_3, %c0_4] : memref<256x128xf8E4M3FN, #tpu.memory_space<vmem>>, vector<256x128xf8E4M3FN>
    %15 = arith.extf %14 : vector<256x128xf8E4M3FN> to vector<256x128xbf16>
    %c0_5 = arith.constant 0 : index
    %c0_6 = arith.constant 0 : index
    %16 = vector.load %arg8[%c0_5, %c0_6] : memref<16x128xf32, #tpu.memory_space<vmem>>, vector<16x128xf32>
    %cst_7 = arith.constant dense<0.000000e+00> : vector<16x128xf32>
    %17 = tpu.matmul %13, %15, %cst_7 {dimension_numbers = #tpu.dot_dimension_numbers<[1], [0], [0], [1], [0, 0, 1, 1], [], []>} : vector<16x256xbf16>, vector<256x128xbf16>, vector<16x128xf32> -> vector<16x128xf32>
    %18 = arith.addf %16, %17 : vector<16x128xf32>
    %c0_8 = arith.constant 0 : index
    %c0_9 = arith.constant 0 : index
    %19 = vector.load %arg8[%c0_8, %c0_9] : memref<16x128xf32, #tpu.memory_space<vmem>>, vector<16x128xf32>
    tpu.vector_store %arg8[%c0_8, %c0_9], %18 {strides = array<i32>} : memref<16x128xf32, #tpu.memory_space<vmem>>, vector<16x128xf32>,
    %c0_i32_10 = arith.constant 0 : i32
    %20 = arith.cmpi eq, %arg2, %c0_i32_10 : i32
    %21 = arith.extui %20 : i1 to i32
    %c0_i32_11 = arith.constant 0 : i32
    %22 = arith.cmpi ne, %21, %c0_i32_11 : i32
    scf.if %22 {
      %c0_12 = arith.constant 0 : index
      %c0_13 = arith.constant 0 : index
      %23 = vector.load %arg8[%c0_12, %c0_13] : memref<16x128xf32, #tpu.memory_space<vmem>>, vector<16x128xf32>
      %c0_14 = arith.constant 0 : index
      %24 = memref.load %arg3[%c0_14] : memref<2xf32, #tpu.memory_space<smem>>
      %25 = vector.broadcast %24 : f32 to vector<16x128xf32>
      %26 = arith.mulf %23, %25 : vector<16x128xf32>
      %c0_15 = arith.constant 0 : index
      %c0_16 = arith.constant 0 : index
      %27 = vector.load %arg6[%c0_15, %c0_16] : memref<1x128xf32, #tpu.memory_space<vmem>>, vector<1x128xf32>
      %28 = vector.broadcast %27 : vector<1x128xf32> to vector<16x128xf32>
      %29 = arith.addf %26, %28 : vector<16x128xf32>
      %30 = arith.truncf %29 : vector<16x128xf32> to vector<16x128xbf16>
      %c0_17 = arith.constant 0 : index
      %c0_18 = arith.constant 0 : index
      %31 = vector.load %arg7[%c0_17, %c0_18] : memref<16x128xbf16, #tpu.memory_space<vmem>>, vector<16x128xbf16>
      tpu.vector_store %arg7[%c0_17, %c0_18], %30 {strides = array<i32>} : memref<16x128xbf16, #tpu.memory_space<vmem>>, vector<16x128xbf16>,
    } else {
    }
    return
  }
  func.func @transform_0(%arg0: i32, %arg1: i32, %arg2: i32, %arg3: memref<2xf32, #tpu.memory_space<smem>>) -> (i32, i32) {
    %c0_i32 = arith.constant 0 : i32
    return %arg0, %arg2 : i32, i32
  }
  func.func @transform_1(%arg0: i32, %arg1: i32, %arg2: i32, %arg3: memref<2xf32, #tpu.memory_space<smem>>) -> (i32, i32) {
    %c0_i32 = arith.constant 0 : i32
    return %arg2, %arg1 : i32, i32
  }
  func.func @transform_2(%arg0: i32, %arg1: i32, %arg2: i32, %arg3: memref<2xf32, #tpu.memory_space<smem>>) -> (i32, i32) {
    %c0_i32 = arith.constant 0 : i32
    %c0_i32_0 = arith.constant 0 : i32
    return %c0_i32, %arg1 : i32, i32
  }
  func.func @transform_3(%arg0: i32, %arg1: i32, %arg2: i32, %arg3: memref<2xf32, #tpu.memory_space<smem>>) -> (i32, i32) {
    %c0_i32 = arith.constant 0 : i32
    return %arg0, %arg1 : i32, i32
  }
}

</mosaic_0001>

<bundles_post_ra>
// kernel: tpu_custom_call.1
= control target key start
LH: loop header
LB: loop body
LE: loop exit
PB: predicated region body
PF: predicated region fallthrough
CT: control target
= control target key end

     0   :  { %s470_s0 = inlined_call_operand.hbm [shape: f32[2], index: 0, kind: input, shape index: {}]   ;;  %s471_s1 = inlined_call_operand.hbm [shape: bf16[16,256], index: 1, kind: input, shape index: {}]   ;;  %s472_s2 = inlined_call_operand.hbm [shape: f8e4m3fn[256,128], index: 2, kind: input, shape index: {}]   ;;  %s473_s3 = inlined_call_operand.hbm [shape: f32[1,128], index: 3, kind: input, shape index: {}]   ;;  %s474_s4 = inlined_call_operand.hbm [shape: bf16[16,128], index: 4, kind: output, shape index: {}]  }
   0x1   :  { %s263_s17 = scalar_lea.hbm %s470_s0, 16 }
   0x2   :  { %p264_p0 = scmp.ne.s32.totalorder %s470_s0, %s263_s17  ;;  %p267_p1 = scmp.lt.u32.totalorder %s263_s17, %s470_s0 }
   0x4   :  { %p269_p2 = pnand %p267_p1, %p264_p0 }
   0x6   :  { %272 = shalt.err (!%p269_p2)  }
   0x7   :  { %s369_s22 = smov [#allocation4]  }
   0x8   :  { %10 = dma.hbm_to_smem %s470_s0, 16, %s369_s22, [#allocation3] }
   0x9   :  { %361 = dma.done.wait [#allocation3], 16 }
   0xa   :  { %362 = vsyncadd [#allocation3], 4294967280 }
   0xb   :  { %12 = sfence }
   0xc   :  { %13 = vsyncpa [#allocation6], 0 }
   0xd   :  { %14 = vsyncpa [#allocation9], 0 }
   0xe   :  { %15 = vsyncpa [#allocation7], 0  ;;  %s370_s25 = smov [#allocation8]   ;;  %s371_s27 = smov [#allocation5]  }
   0xf   :  { %s33_s26 = sshll.u32 %s370_s25, 4  ;;  %s21_s28 = sshll.u32 %s371_s27, 4  ;;  %s34_s26 = int_to_ptr.vmem [resolvable:$true] %s33_s26  ;;  %s415_s28 = int_to_ptr.vmem [resolvable:$true] %s21_s28 }
  0x10   :  { %s273_s5 = scalar_lea.hbm %s472_s2, 1024 }
  0x11   :  { %p274_p3 = scmp.ne.s32.totalorder %s472_s2, %s273_s5  ;;  %p277_p4 = scmp.lt.u32.totalorder %s273_s5, %s472_s2 }
  0x13   :  { %p279_p5 = pnand %p277_p4, %p274_p3 }
  0x15   :  { %282 = shalt.err (!%p279_p5)
}
  0x16   :  { %s283_s9 = scalar_lea.vmem %s34_s26, 1024  ;;  %p288_p7 = scmp.lt.s32.totalorder %s34_s26, %s34_s26 }
  0x17   :  { %p284_p6 = scmp.ne.s32.totalorder %s34_s26, %s283_s9  ;;  %p289_p8 = scmp.lt.s32.totalorder %s283_s9, %s283_s9 }
  0x19   :  { %p290_p9 = por %p289_p8, %p288_p7 }
  0x1b   :  { %p291_p10 = pnand %p290_p9, %p284_p6 }
  0x1d   :  { %294 = shalt.err (!%p291_p10)
}
  0x1e   :  { %s372_s10 = smov 128   ;;  %s373_s11 = smov 8  }
  0x1f   :  { %39 = dma.hbm_to_vmem [thread:$0]  %s472_s2, 1024, %s34_s26, [#allocation9], %s372_s10, %s372_s10, %s373_s11  }
  0x20   :  { %s295_s16 = scalar_lea.hbm %s471_s1, 256 }
  0x21   :  { %p296_p11 = scmp.ne.s32.totalorder %s471_s1, %s295_s16  ;;  %p299_p12 = scmp.lt.u32.totalorder %s295_s16, %s471_s1 }
  0x23   :  { %p301_p13 = pnand %p299_p12, %p296_p11 }
  0x25   :  { %304 = shalt.err (!%p301_p13)
}
  0x26   :  { %s305_s21 = scalar_lea.vmem %s415_s28, 256  ;;  %p310_p1 = scmp.lt.s32.totalorder %s415_s28, %s415_s28 }
  0x27   :  { %p306_p0 = scmp.ne.s32.totalorder %s415_s28, %s305_s21  ;;  %p311_p2 = scmp.lt.s32.totalorder %s305_s21, %s305_s21 }
  0x29   :  { %p312_p3 = por %p311_p2, %p310_p1 }
  0x2b   :  { %p313_p4 = pnand %p312_p3, %p306_p0 }
  0x2d   :  { %316 = shalt.err (!%p313_p4)
}
  0x2e   :  { %27 = dma.hbm_to_vmem [thread:$0]  %s471_s1, 256, %s415_s28, [#allocation6], %s372_s10, %s372_s10, %s373_s11  }
  0x2f   :  { %s374_s23 = smov [#allocation10]   ;;  %s317_s27 = scalar_lea.hbm %s473_s3, 16 }
  0x30   :  { %s46_s24 = sshll.u32 %s374_s23, 4  ;;  %p318_p5 = scmp.ne.s32.totalorder %s473_s3, %s317_s27  ;;  %s47_s24 = int_to_ptr.vmem [resolvable:$true] %s46_s24 }
  0x31   :  { %p321_p6 = scmp.lt.u32.totalorder %s317_s27, %s473_s3 }
  0x33   :  { %p323_p7 = pnand %p321_p6, %p318_p5 }
  0x35   :  { %326 = shalt.err (!%p323_p7)
}
  0x36   :  { %s327_s7 = scalar_lea.vmem %s47_s24, 16  ;;  %s331_s1 = scalar_lea.vmem %s47_s24, 32 }
  0x37   :  { %p328_p8 = scmp.ne.s32.totalorder %s47_s24, %s327_s7  ;;  %p332_p9 = scmp.lt.s32.totalorder %s47_s24, %s47_s24 }
  0x38   :  { %p333_p10 = scmp.lt.s32.totalorder %s331_s1, %s327_s7 }
  0x3a   :  { %p334_p11 = por %p333_p10, %p332_p9 }
  0x3c   :  { %p335_p12 = pnand %p334_p11, %p328_p8 }
  0x3e   :  { %338 = shalt.err (!%p335_p12)
}
  0x3f   :  { %49 = dma.hbm_to_vmem [thread:$0]  %s473_s3, 16, %s47_s24, [#allocation9]  }
  0x40   :  { %363 = dma.done.wait [#allocation6], 256  }
  0x41   :  { %364 = vsyncadd [#allocation6], 4294967040 }
  0x42   :  { %365 = dma.done.wait [#allocation9], 1040  }
  0x43   :  { %366 = vsyncadd [#allocation9], 4294966256  ;;  %s217_s8 = sld [smem:[#allocation4 + $0x1]]  ;;  %v104_v0 = vld [vmem:[#allocation8 + $0x20] sm:$0xff]  ;;  %v105_v5 = vld [vmem:[#allocation8 + $0x28] sm:$0xff]  ;;  %s176_s3 = sld [smem:[#allocation4]] }
  0x44   :  { %v100_v1 = vld [vmem:[#allocation8] sm:$0xff]  ;;  %v116_v2 = vunpack.c.l.f8e4m3fn %v104_v0  ;;  %v117_v3 = vunpack.c.h.f8e4m3fn %v104_v0  ;;  %v67_v6 = vld [vmem:[#allocation5] sm:$0xff]  ;;  %v68_v7 = vld [vmem:[#allocation5 + $0x8] sm:$0xff]  ;;  %v118_v10 = vunpack.c.l.f8e4m3fn %v105_v5  ;;  %v119_v17 = vunpack.c.h.f8e4m3fn %v105_v5  ;;  %s375_s9 = smov [#allocation11]  }
  0x45   :  { %v108_v4 = vunpack.c.l.f8e4m3fn %v100_v1  ;;  %v109_v8 = vunpack.c.h.f8e4m3fn %v100_v1  ;;  %v101_v11 = vld [vmem:[#allocation8 + $0x8] sm:$0xff]  ;;  %v70_v12 = vunpack.c.h.bf16 %v67_v6  ;;  %v72_v13 = vunpack.c.h.bf16 %v68_v7  ;;  %v106_v20 = vld [vmem:[#allocation8 + $0x30] sm:$0xff]  ;;  %v107_v33 = vld [vmem:[#allocation8 + $0x38] sm:$0xff]  ;;  %s204_s10 = sshll.u32 %s375_s9, 4  ;;  %s205_s10 = int_to_ptr.vmem [resolvable:$true] %s204_s10 }
  0x46   :  { %232 = vmatprep.subr.bf16.mxu0 %v116_v2  ;;  %v110_v16 = vunpack.c.l.f8e4m3fn %v101_v11  ;;  %v69_v21 = vunpack.c.l.bf16 %v67_v6  ;;  %v71_v22 = vunpack.c.l.bf16 %v68_v7  ;;  %v111_v24 = vunpack.c.h.f8e4m3fn %v101_v11  ;;  %v102_v26 = vld [vmem:[#allocation8 + $0x10] sm:$0xff]  ;;  %v103_v38 = vld [vmem:[#allocation8 + $0x18] sm:$0xff]  ;;  %v222_v53 = vld [vmem:[#allocation10] ss:$0 sm:$0xff]  ;;  %s339_s11 = scalar_lea.vmem %s205_s10, 128  ;;  %p344_p0 = scmp.lt.s32.totalorder %s205_s10, %s205_s10 }
  0x47   :  { %233 = vmatpush3.bf16.msra.mxu0 %v108_v4  ;;  %v120_v25 = vunpack.c.l.f8e4m3fn %v106_v20  ;;  %v112_v31 = vunpack.c.l.f8e4m3fn %v102_v26  ;;  %v121_v32 = vunpack.c.h.f8e4m3fn %v106_v20  ;;  %v113_v36 = vunpack.c.h.f8e4m3fn %v102_v26  ;;  %p340_p13 = scmp.ne.s32.totalorder %s205_s10, %s339_s11  ;;  %p345_p1 = scmp.lt.s32.totalorder %s339_s11, %s339_s11 }
  0x48   :  { %234 = vmatprep.subr.bf16.mxu0 %v117_v3  ;;  %v122_v37 = vunpack.c.l.f8e4m3fn %v107_v33  ;;  %v114_v40 = vunpack.c.l.f8e4m3fn %v103_v38  ;;  %v123_v41 = vunpack.c.h.f8e4m3fn %v107_v33  ;;  %v115_v43 = vunpack.c.h.f8e4m3fn %v103_v38 }
  0x49   :  { %v73_v9 = vstv %s217_s8  ;;  %v177_v47 = vstv %s176_s3  ;;  %p346_p2 = por %p345_p1, %p344_p0 }
  0x4a   :  { %v75_v14 = vmul.f32 %v73_v9, %v70_v12  ;;  %v77_v15 = vmul.f32 %v73_v9, %v72_v13  ;;  %v74_v29 = vmul.f32 %v73_v9, %v69_v21  ;;  %v76_v30 = vmul.f32 %v73_v9, %v71_v22 }
  0x4b   :  { %235 = vmatpush3.bf16.msra.mxu0 %v109_v8  ;;  %p347_p3 = pnand %p346_p2, %p340_p13 }
  0x4c   :  { %236 = vmatprep.subr.bf16.mxu0 %v118_v10  ;;  %v219_v18 = vclamps-f32 %v75_v14, 448.0  ;;  %v221_v19 = vclamps-f32 %v77_v15, 448.0  ;;  %v218_v34 = vclamps-f32 %v74_v29, 448.0  ;;  %v220_v35 = vclamps-f32 %v76_v30, 448.0 }
  0x4e   :  { %v92_v23 = vpack.c.f32.eXmY %v219_v18, %v221_v19, 61788  ;;  %v86_v39 = vpack.c.f32.eXmY %v218_v34, %v220_v35, 61788 }
  0x4f   :  { %237 = vmatpush3.bf16.msra.mxu0 %v110_v16 }
  0x50   :  { %238 = vmatprep.subr.bf16.mxu0 %v119_v17  ;;  %v96_v27 = vpack.c.b8 %v92_v23, %v92_v23  ;;  %v90_v42 = vpack.c.b8 %v86_v39, %v86_v39 }
  0x52   :  { %v99_v28 = vunpack.c.l.f8e4m3fn %v96_v27  ;;  %v98_v44 = vunpack.c.l.f8e4m3fn %v90_v42 }
  0x53   :  { %239 = vmatpush3.bf16.msra.mxu0 %v111_v24 }
  0x54   :  { %240 = vmatprep.subr.bf16.mxu0 %v120_v25  ;;  %158 = vmatprep.mubr.bf16.mxu0 %v99_v28 }
  0x57   :  { %241 = vmatpush3.bf16.msra.mxu0 %v112_v31 }
  0x58   :  { %242 = vmatprep.subr.bf16.mxu0 %v121_v32 }
  0x5b   :  { %243 = vmatpush3.bf16.msra.mxu0 %v113_v36 }
  0x5c   :  { %244 = vmatprep.subr.bf16.mxu0 %v122_v37 }
  0x5f   :  { %245 = vmatpush3.bf16.msra.mxu0 %v114_v40 }
  0x60   :  { %246 = vmatprep.subr.bf16.mxu0 %v123_v41 }
  0x63   :  { %247 = vmatpush3.bf16.msra.mxu0 %v115_v43 }
  0x66   :  { %159 = vmatmul.mubr.bf16.vlgmr.msra.gmra.mrb[0].mxu0 %v98_v44 }
 0x139   :  { %v248_v45 = vpop.f32.mrb[0].mxu0 }
 0x13a   :  { %v249_v46 = vpop.f32.mrb[1].mxu0 }
 0x13b   :  { %v250_v48 = vadd.f32 %v249_v46, %v248_v45  ;;  %v251_v49 = vpop.f32.mrb[2].mxu0 }
 0x13c   :  { %v252_v50 = vpop.f32.mrb[3].mxu0 }
 0x13d   :  { %v178_v51 = vmul.f32 %v250_v48, %v177_v47  ;;  %v253_v52 = vadd.f32 %v252_v50, %v251_v49 }
 0x13f   :  { %v179_v54 = vmul.f32 %v253_v52, %v177_v47  ;;  %v187_v55 = vadd.f32 %v222_v53, %v178_v51 }
 0x141   :  { %v188_v56 = vadd.f32 %v222_v53, %v179_v54 }
 0x143   :  { %v230_v57 = vpack.c.bf16 %v188_v56, %v187_v55 }
 0x145   :  { %231 = vst [vmem:[#allocation11] sm:$0xff] %v230_v57  }
 0x146   :  { %350 = shalt.err (!%p347_p3)
}
 0x147   :  { %s351_s14 = scalar_lea.hbm %s474_s4, 128 }
 0x148   :  { %p352_p4 = scmp.ne.s32.totalorder %s474_s4, %s351_s14  ;;  %p355_p5 = scmp.lt.u32.totalorder %s351_s14, %s474_s4 }
 0x14a   :  { %p357_p6 = pnand %p355_p5, %p352_p4 }
 0x14c   :  { %360 = shalt.err (!%p357_p6)
}
 0x14d   :  { %s376_s19 = smov 64   ;;  %s377_s20 = smov 4  }
 0x14e   :  { %210 = dma.vmem_to_hbm [thread:$0]  %s205_s10, 128, %s474_s4, [#allocation7], %s376_s19, %s376_s19, %s377_s20  }
 0x14f   :  { %367 = dma.done.wait [#allocation7], 128  }
 0x150   :  { %368 = vsyncadd [#allocation7], 4294967168 }
 0x151   :  { %214 = vsyncpa [#allocation6], 1 }
 0x152   :  { %215 = vsyncpa [#allocation9], 1 }
 0x153   :  { %216 = vsyncpa [#allocation7], 1 }

</bundles_post_ra>
